<compile_context>
chip_gen: v6e
topology: v6e:2x2x1
jax: 0.10.0
libtpu: 0.0.40
codegen_flags: <defaults>
</compile_context>

<pallas_src>
import jax
import jax.numpy as jnp
from jax.experimental import pallas as pl
from jax.experimental.pallas import tpu as pltpu


def _message_block_kernel(x_ref, w1_ref, b1_ref, w2_ref, b2_ref, o_ref):
    # x_ref / o_ref: (NB, C, TN)  — spatial on lanes, channels on sublanes.
    # w1_ref: (Cr, C), b1_ref: (Cr, 1), w2_ref: (C, Cr), b2_ref: (C, 1).
    w1 = w1_ref[...]
    b1 = b1_ref[...]
    w2 = w2_ref[...]
    b2 = b2_ref[...]
    for b in range(x_ref.shape[0]):          # NB is small & static -> unrolled
        x = x_ref[b]                         # (C, TN)
        h = jnp.dot(w1, x, preferred_element_type=jnp.float32) + b1
        h = jnp.maximum(h, 0.0)              # (Cr, TN)   ReLU after conv1
        y = jnp.dot(w2, h, preferred_element_type=jnp.float32) + b2
        y = jnp.maximum(y, 0.0)              # (C, TN)    ReLU after conv2
        o_ref[b] = y.astype(o_ref.dtype)


def message_block_forward(x_nchw, w1, b1, w2, b2, *, target_block_bytes=1 << 20):
    """x_nchw: (N, C, H, W).  w1: (C//4, C) [= conv1.weight squeezed],
    b1: (C//4,), w2: (C, C//4) [= conv2.weight squeezed], b2: (C,).
    Returns (N, C, H, W)."""
    N, C, H, W = x_nchw.shape
    Cr = w1.shape[0]
    assert w1.shape == (Cr, C) and w2.shape == (C, Cr)
    assert b1.shape == (Cr,) and b2.shape == (C,)

    HW = H * W
    x3 = x_nchw.reshape(N, C, HW)            # free view: no transpose, no copy

    itemsize = x_nchw.dtype.itemsize
    # Spatial (lane) tile: ~target_block_bytes per image-slab, multiple of 128,
    # or the full extent if the feature map is small.
    target_elems = max(128, target_block_bytes // (C * itemsize))
    tn = max(128, (target_elems // 128) * 128)
    tn_eff = HW if HW <= tn else tn
    grid_t = pl.cdiv(HW, tn_eff)

    # If spatial tiles are small, pack a few images per block so each DMA
    # moves a decent chunk; but keep >= 2 grid steps when possible (v7x has
    # two TensorCores sharing 'parallel' grid axes).
    per_img_bytes = C * tn_eff * itemsize
    nb = max(1, min(N, 8, target_block_bytes // max(per_img_bytes, 1)))
    while nb > 1 and grid_t * pl.cdiv(N, nb) < 2:
        nb //= 2
    grid = (pl.cdiv(N, nb), grid_t)

    b1_col = b1.reshape(Cr, 1)
    b2_col = b2.reshape(C, 1)

    out = pl.pallas_call(
        _message_block_kernel,
        out_shape=jax.ShapeDtypeStruct((N, C, HW), x_nchw.dtype),
        grid_spec=pltpu.PrefetchScalarGridSpec(
            num_scalar_prefetch=0,
            grid=grid,
            in_specs=[
                pl.BlockSpec((nb, C, tn_eff), lambda i, j: (i, 0, j)),  # x
                pl.BlockSpec((Cr, C), lambda i, j: (0, 0)),             # w1
                pl.BlockSpec((Cr, 1), lambda i, j: (0, 0)),             # b1
                pl.BlockSpec((C, Cr), lambda i, j: (0, 0)),             # w2
                pl.BlockSpec((C, 1), lambda i, j: (0, 0)),              # b2
            ],
            out_specs=pl.BlockSpec((nb, C, tn_eff), lambda i, j: (i, 0, j)),
        ),
        compiler_params=pltpu.CompilerParams(
            dimension_semantics=("parallel", "parallel")),
    )(x3, w1, b1_col, w2, b2_col)

    return out.reshape(N, C, H, W)           # free view back to NCHW


def init_params(key, in_channels):
    """Matches message_block.init_weights(): conv1 ~ N(0, 0.01), bias 0;
    conv2 ~ N(0, 0.001), bias 0.  1x1 conv weight (O, I, 1, 1) is stored
    squeezed as (O, I) — exactly the PyTorch layout, no transpose needed."""
    cr = in_channels // 4
    k1, k2 = jax.random.split(key)
    w1 = 0.01 * jax.random.normal(k1, (cr, in_channels), jnp.float32)    # (Cr, C)
    b1 = jnp.zeros((cr,), jnp.float32)
    w2 = 0.001 * jax.random.normal(k2, (in_channels, cr), jnp.float32)   # (C, Cr)
    b2 = jnp.zeros((in_channels,), jnp.float32)
    return w1, b1, w2, b2


def _reference(x_nchw, w1, b1, w2, b2):
    # pure-JAX NCHW reference of the two 1x1 convs + ReLUs
    h = jnp.einsum('oc,nchw->nohw', w1, x_nchw) + b1[None, :, None, None]
    h = jnp.maximum(h, 0.0)
    y = jnp.einsum('oc,nchw->nohw', w2, h) + b2[None, :, None, None]
    return jnp.maximum(y, 0.0)


if __name__ == "__main__":
    key = jax.random.PRNGKey(0)
    kx, kp = jax.random.split(key)

    N, C, H, W = 2, 16, 16, 16            # in_channels=16 -> hidden=4
    Cr = C // 4
    x = jax.random.normal(kx, (N, C, H, W), jnp.float32)

    # Random weights AND non-zero biases for a meaningful numerical check
    # (module's init_weights() uses zero biases; see init_params above).
    kw1, kb1, kw2, kb2 = jax.random.split(kp, 4)
    w1 = 0.1 * jax.random.normal(kw1, (Cr, C), jnp.float32)
    b1 = 0.1 * jax.random.normal(kb1, (Cr,), jnp.float32)
    w2 = 0.1 * jax.random.normal(kw2, (C, Cr), jnp.float32)
    b2 = 0.1 * jax.random.normal(kb2, (C,), jnp.float32)

    y = jax.block_until_ready(message_block_forward(x, w1, b1, w2, b2))
    y_ref = _reference(x, w1, b1, w2, b2)
    assert y.shape == (N, C, H, W)
    assert jnp.allclose(y, y_ref, atol=1e-5, rtol=1e-5)

    # Also exercise the module's own init (zero biases).
    w1i, b1i, w2i, b2i = init_params(kp, C)
    yi = jax.block_until_ready(message_block_forward(x, w1i, b1i, w2i, b2i))
    assert jnp.allclose(yi, _reference(x, w1i, b1i, w2i, b2i), atol=1e-5, rtol=1e-5)

    print("KERNEL_OK")
</pallas_src>

<mosaic_0001>
module attributes {stable_mosaic.version = 11 : i64} {
  func.func @_message_block_kernel(%arg0: i32, %arg1: i32, %arg2: memref<1x16x256xf32, #tpu.memory_space<vmem>>, %arg3: memref<4x16xf32, #tpu.memory_space<vmem>>, %arg4: memref<4x1xf32, #tpu.memory_space<vmem>>, %arg5: memref<16x4xf32, #tpu.memory_space<vmem>>, %arg6: memref<16x1xf32, #tpu.memory_space<vmem>>, %arg7: memref<1x16x256xf32, #tpu.memory_space<vmem>>) attributes {dimension_semantics = [#tpu.dimension_semantics<parallel>, #tpu.dimension_semantics<parallel>], iteration_bounds = array<i64: 2, 1>, scalar_prefetch = 0 : i64, scratch_operands = 0 : i64, tpu.core_type = #tpu.core_type<tc>, window_params = [{transform_indices = @transform_0, window_bounds = array<i64: 1, 16, 256>}, {pipeline_mode = #tpu.pipeline_mode<synchronous>, transform_indices = @transform_1, window_bounds = array<i64: 4, 16>}, {pipeline_mode = #tpu.pipeline_mode<synchronous>, transform_indices = @transform_2, window_bounds = array<i64: 4, 1>}, {pipeline_mode = #tpu.pipeline_mode<synchronous>, transform_indices = @transform_3, window_bounds = array<i64: 16, 4>}, {pipeline_mode = #tpu.pipeline_mode<synchronous>, transform_indices = @transform_4, window_bounds = array<i64: 16, 1>}, {transform_indices = @transform_5, window_bounds = array<i64: 1, 16, 256>}]} {
    %c0 = arith.constant 0 : index
    %c0_0 = arith.constant 0 : index
    %0 = vector.load %arg3[%c0, %c0_0] : memref<4x16xf32, #tpu.memory_space<vmem>>, vector<4x16xf32>
    %c0_1 = arith.constant 0 : index
    %c0_2 = arith.constant 0 : index
    %1 = vector.load %arg4[%c0_1, %c0_2] : memref<4x1xf32, #tpu.memory_space<vmem>>, vector<4x1xf32>
    %c0_3 = arith.constant 0 : index
    %c0_4 = arith.constant 0 : index
    %2 = vector.load %arg5[%c0_3, %c0_4] : memref<16x4xf32, #tpu.memory_space<vmem>>, vector<16x4xf32>
    %c0_5 = arith.constant 0 : index
    %c0_6 = arith.constant 0 : index
    %3 = vector.load %arg6[%c0_5, %c0_6] : memref<16x1xf32, #tpu.memory_space<vmem>>, vector<16x1xf32>
    %c0_7 = arith.constant 0 : index
    %c0_8 = arith.constant 0 : index
    %c0_9 = arith.constant 0 : index
    %4 = vector.load %arg2[%c0_7, %c0_8, %c0_9] : memref<1x16x256xf32, #tpu.memory_space<vmem>>, vector<1x16x256xf32>
    %5 = vector.shape_cast %4 : vector<1x16x256xf32> to vector<16x256xf32>
    %cst = arith.constant dense<0.000000e+00> : vector<4x256xf32>
    %6 = tpu.matmul %0, %5, %cst {dimension_numbers = #tpu.dot_dimension_numbers<[1], [0], [0], [1], [0, 0, 1, 1], [], []>} : vector<4x16xf32>, vector<16x256xf32>, vector<4x256xf32> -> vector<4x256xf32>
    %7 = vector.broadcast %1 : vector<4x1xf32> to vector<4x256xf32>
    %8 = arith.addf %6, %7 : vector<4x256xf32>
    %cst_10 = arith.constant 0.000000e+00 : f32
    %9 = vector.broadcast %cst_10 : f32 to vector<4x256xf32>
    %10 = arith.maximumf %8, %9 : vector<4x256xf32>
    %cst_11 = arith.constant dense<0.000000e+00> : vector<16x256xf32>
    %11 = tpu.matmul %2, %10, %cst_11 {dimension_numbers = #tpu.dot_dimension_numbers<[1], [0], [0], [1], [0, 0, 1, 1], [], []>} : vector<16x4xf32>, vector<4x256xf32>, vector<16x256xf32> -> vector<16x256xf32>
    %12 = vector.broadcast %3 : vector<16x1xf32> to vector<16x256xf32>
    %13 = arith.addf %11, %12 : vector<16x256xf32>
    %cst_12 = arith.constant 0.000000e+00 : f32
    %14 = vector.broadcast %cst_12 : f32 to vector<16x256xf32>
    %15 = arith.maximumf %13, %14 : vector<16x256xf32>
    %c0_13 = arith.constant 0 : index
    %c0_14 = arith.constant 0 : index
    %c0_15 = arith.constant 0 : index
    %16 = vector.load %arg7[%c0_13, %c0_14, %c0_15] : memref<1x16x256xf32, #tpu.memory_space<vmem>>, vector<1x16x256xf32>
    %17 = vector.shape_cast %16 : vector<1x16x256xf32> to vector<16x256xf32>
    %18 = vector.shape_cast %15 : vector<16x256xf32> to vector<1x16x256xf32>
    tpu.vector_store %arg7[%c0_13, %c0_14, %c0_15], %18 {strides = array<i32>} : memref<1x16x256xf32, #tpu.memory_space<vmem>>, vector<1x16x256xf32>,
    return
  }
  func.func @transform_0(%arg0: i32, %arg1: i32) -> (i32, i32, i32) {
    %c0_i32 = arith.constant 0 : i32
    %c0_i32_0 = arith.constant 0 : i32
    return %arg0, %c0_i32, %arg1 : i32, i32, i32
  }
  func.func @transform_1(%arg0: i32, %arg1: i32) -> (i32, i32) {
    %c0_i32 = arith.constant 0 : i32
    %c0_i32_0 = arith.constant 0 : i32
    %c0_i32_1 = arith.constant 0 : i32
    return %c0_i32, %c0_i32_0 : i32, i32
  }
  func.func @transform_2(%arg0: i32, %arg1: i32) -> (i32, i32) {
    %c0_i32 = arith.constant 0 : i32
    %c0_i32_0 = arith.constant 0 : i32
    %c0_i32_1 = arith.constant 0 : i32
    return %c0_i32, %c0_i32_0 : i32, i32
  }
  func.func @transform_3(%arg0: i32, %arg1: i32) -> (i32, i32) {
    %c0_i32 = arith.constant 0 : i32
    %c0_i32_0 = arith.constant 0 : i32
    %c0_i32_1 = arith.constant 0 : i32
    return %c0_i32, %c0_i32_0 : i32, i32
  }
  func.func @transform_4(%arg0: i32, %arg1: i32) -> (i32, i32) {
    %c0_i32 = arith.constant 0 : i32
    %c0_i32_0 = arith.constant 0 : i32
    %c0_i32_1 = arith.constant 0 : i32
    return %c0_i32, %c0_i32_0 : i32, i32
  }
  func.func @transform_5(%arg0: i32, %arg1: i32) -> (i32, i32, i32) {
    %c0_i32 = arith.constant 0 : i32
    %c0_i32_0 = arith.constant 0 : i32
    return %arg0, %c0_i32, %arg1 : i32, i32, i32
  }
}

</mosaic_0001>

<bundles_post_ra>
// kernel: tpu_custom_call.1
= control target key start
LH: loop header
LB: loop body
LE: loop exit
PB: predicated region body
PF: predicated region fallthrough
CT: control target
= control target key end

     0   :  { %10 = vsyncpa [#allocation3], 0  ;;  %s975_s0 = inlined_call_operand.hbm [shape: f32[2,16,256], index: 0, kind: input, shape index: {}]   ;;  %s976_s1 = inlined_call_operand.vmem [shape: f32[4,16], index: 1, kind: input, shape index: {}]   ;;  %s977_s2 = inlined_call_operand.vmem [shape: f32[4,1], index: 2, kind: input, shape index: {}]   ;;  %s978_s3 = inlined_call_operand.vmem [shape: f32[16,4], index: 3, kind: input, shape index: {}]   ;;  %s979_s4 = inlined_call_operand.vmem [shape: f32[16,1], index: 4, kind: input, shape index: {}]   ;;  %s980_s5 = inlined_call_operand.hbm [shape: f32[2,16,256], index: 5, kind: output, shape index: {}]  }
   0x1   :  { %12 = vsyncpa [#allocation3 + $0x1], 0 }
   0x2   :  { %13 = vsyncpa [#allocation4], 0 }
   0x3   :  { %15 = vsyncpa [#allocation4 + $0x1], 0  ;;  %s807_s18 = smov 0   ;;  %s809_s19 = smov 0  }
   0x4   :  { %s811_s20 = smov 0   ;;  %s813_s21 = smov 0  }
   0x5   :  { %s815_s22 = smov 0   ;;  %s817_s23 = smov 0  }
   0x6 LB: > { %s567_s24 = sadd.s32 4294967295, %s767_s23   ;;  %s568_s25 = sadd.s32 4294967294, %s767_s23   ;;  %s767_s23 = sphi %s817_s23, %s21_s23   ;;  %s763_s22 = sphi %s815_s22, %s991_s22   ;;  %s759_s21 = sphi %s813_s21, %s990_s21   ;;  %s755_s20 = sphi %s811_s20, %s989_s20   ;;  %s751_s19 = sphi %s809_s19, %s988_s19   ;;  %s747_s18 = sphi %s807_s18, %s987_s18  }
   0x7   : > { %s33_s26 = sadd.s32 1, %s763_s22  ;;  %s42_s27 = sadd.s32 1, %s755_s20 }
   0x8   : > { %p35_p0 = scmp.ge.s32.totalorder %s33_s26, 2  ;;  %p49_p1 = scmp.ne.s32.totalorder %s755_s20, %s751_s19 }
   0x9   : > { %p50_p2 = scmp.eq.s32.totalorder %s767_s23, 0  ;;  %p55_p3 = scmp.ne.s32.totalorder %s751_s19, %s747_s18 }
   0xa   : > { %s993_s26 = smov (%p35_p0, %s33_s26), 0  ;;  %p56_p5 = scmp.eq.s32.totalorder %s567_s24, 0 }
   0xb   : > { %p848_p4 = por %p50_p2, %p49_p1  ;;  %s37_s29 = ssub.s32 %s763_s22, %s993_s26 }
   0xc   : > { %p165_p6 = scmp.eq.s32.totalorder %s567_s24, 1  ;;  %p40_p7 = scmp.eq.s32.totalorder %s37_s29, 0 }
   0xd   : > { %p854_p8 = por %p56_p5, %p55_p3  ;;  %p171_p10 = scmp.eq.s32.totalorder %s568_s25, 1 }
   0xe   : > { %p858_p9 = por %p165_p6, %p49_p1  ;;  %p601_p13 = scmp.lt.s32.totalorder %s767_s23, 2 }
   0xf   : > { %s863_s7 = scalar_select %p40_p7, %s755_s20, %s42_s27  }
  0x10   : > { %p865_p11 = por %p171_p10, %p55_p3  ;;  %s203_s9 = sand.u32 1, %s755_s20  }
  0x11   : > { %s571_s10 = sshll.u32 %s203_s9, 5  ;;  %s587_s11 = sshll.u32 %s763_s22, 9 }
  0x12   : > { %s215_s14 = scalar_lea.hbm %s975_s0, %s587_s11  ;;  %s207_s15 = scalar_lea.vmem [#allocation2], %s571_s10 }
  0x13   : > { %s216_s16 = sshll.u32 %s207_s15, 4  ;;  %p878_p0 = pnand %p601_p13, %p848_p4  ;;  %s217_s16 = int_to_ptr.vmem [resolvable:$true] %s216_s16 }
  0x14   : > { %p574_p1 = scmp.ge.s32.totalorder %s767_s23, 1  ;;  %s204_s24 = scalar_lea.sflag [#allocation3], %s203_s9 }
  0x15   : > { %p661_p2 = pneg %p878_p0  ;;  %s672_s25 = scalar_lea.vmem %s217_s16, 512 }
  0x16   : > { %p673_p3 = scmp.ne.s32.totalorder %s217_s16, %s672_s25  ;;  %s769_s27 = smov [#allocation2]  }
  0x17   : > { %s677_s29 = sshll.u32 %s769_s27, 4  ;;  %s678_s29 = int_to_ptr.vmem [resolvable:$false] %s677_s29 }
  0x18   : > { %p675_p5 = pnand %p673_p3, %p661_p2  ;;  %s679_s10 = scalar_lea.vmem %s678_s29, 1024 }
  0x19   : > { %p680_p7 = scmp.lt.s32.totalorder %s217_s16, %s678_s29  ;;  %p681_p10 = scmp.lt.s32.totalorder %s679_s10, %s672_s25 }
  0x1a   : > { %p676_p6 = pneg %p675_p5 }
  0x1b   : > { %p682_p12 = por %p681_p10, %p680_p7 }
  0x1d   : > { %p683_p4 = pnand %p682_p12, %p676_p6 }
  0x1f   : > { %686 = shalt.err (!%p683_p4)
}
  0x20   : > { %s770_s28 = smov 256   ;;  %s771_s9 = smov 16  }
  0x21   : > { %596 = dma.hbm_to_vmem [thread:$0]  (!%p878_p0), %s215_s14, 512, %s217_s16, %s204_s24, %s770_s28, %s770_s28, %s771_s9  }
  0x22   : > { %p224_p13 = scmp.lt.s32.totalorder %s767_s23, 3 }
  0x24   : > { %p225_p2 = pnand %p574_p1, %p224_p13 }
  0x25   : > { %s891_s11 = sand.u32 (!%p225_p2), 1, %s751_s19  }
  0x26   : > { %228 = sbr.rel (%p225_p2) target bundleno = 469 (0x1d5), region = 40  ;;  %s575_s12 = sshll.u32 (!%p225_p2), %s891_s11, 5 }
  0x27   : > { %s231_s13 = scalar_lea.sflag (!%p225_p2), [#allocation3], %s891_s11  ;;  %s234_s15 = scalar_lea.vmem (!%p225_p2), [#allocation2], %s575_s12 }
  0x2b   : > { %738 = dma.done.wait (%p854_p8), %s231_s13, 512  }
  0x2c   : > { %740 = vsyncadd (%p854_p8), %s231_s13, 4294966784  ;;  %v772_v0 = vmov 0.0   ;;  %v773_v1 = vmov 0   ;;  %v272_v2 = vld [vmem:[%s234_s15 + $0x18] sm:$0xff]  ;;  %v271_v3 = vld [vmem:[%s234_s15 + $0x10] sm:$0xff]  ;;  %vm278_vm0 = vcmask 130048  }
  0x2d   : > { %346 = vmatprep.mubr.f32.mxu0 %v772_v0  ;;  %657 = vset.pattern.permute.xlu0 %v773_v1  ;;  %v270_v4 = vld [vmem:[%s234_s15 + $0x8] sm:$0xff]  ;;  %v269_v5 = vld [vmem:[%s234_s15] sm:$0xff]  ;;  %vm372_vm1 = vcmask 1043456   ;;  %vm365_vm2 = vcmask 31744   ;;  %s260_s15 = scalar_lea.vmem [#allocation5], %s575_s12  ;;  %s588_s16 = sshll.u32 %s759_s21, 9 }
  0x2e   : > { %443 = vmatprep.mubr.f32.mxu1 %v772_v0  ;;  %658 = vset.pattern.permute.xlu1 %v773_v1  ;;  %v264_v6 = vld [vmem:[%s977_s2] sm:$0xf]  ;;  %v268_v9 = vld [vmem:[%s979_s4 + $0x8] sm:$0xff]  ;;  %s480_s14 = sshll.u32 %s260_s15, 4  ;;  %s927_s12 = scalar_lea.hbm %s980_s5, %s588_s16  ;;  %s922_s14 = int_to_ptr.vmem [resolvable:$true] %s480_s14 }
  0x2f   : > { %310 = vmatprep.subr.mxu0 %v272_v2  ;;  %v263_v7 = vld [vmem:[%s976_s1] sm:$0xf]  ;;  %275 = vperm.xlu0 %657, %v264_v6   ;;  %v266_v18 = vld [vmem:[%s978_s3 + $0x8] sm:$0xff]  ;;  %s465_s30 = scalar_lea.sflag [#allocation4], %s891_s11  ;;  %s687_s25 = scalar_lea.vmem %s922_s14, 512 }
  0x30   : > { %311 = vmatpush1.msra.mxu0 %v271_v3  ;;  %v267_v8 = vld [vmem:[%s979_s4] sm:$0xff]  ;;  %362 = vperm.xlu1 %658, %v268_v9   ;;  %p688_p8 = scmp.ne.s32.totalorder %s922_s14, %s687_s25  ;;  %s774_s21 = smov [#allocation5]  }
  0x31   : > { %312 = vmatprep.subr.mxu0 %v270_v4  ;;  %v265_v17 = vld [vmem:[%s978_s3] sm:$0xff]  ;;  %s691_s27 = sshll.u32 %s774_s21, 4  ;;  %s692_s27 = int_to_ptr.vmem [resolvable:$false] %s691_s27 }
  0x32   : > { %313 = vmatpush1.msra.mxu0 %v269_v5  ;;  %p689_p12 = pnand %p688_p8, %p858_p9  ;;  %s693_s29 = scalar_lea.vmem %s692_s27, 1024 }
  0x33   : > { %577 = vmatmul.mubr.msk.f32.vlgmr.msra.gmra.mxu0 %vm278_vm0, %v263_v7  ;;  %357 = vperm.xlu0 %657, %v267_v8   ;;  %p694_p1 = scmp.lt.s32.totalorder %s922_s14, %s692_s27  ;;  %p695_p3 = scmp.lt.s32.totalorder %s693_s29, %s687_s25 }
  0x34   : > { %p690_p0 = pneg %p689_p12 }
  0x35   : > { %p696_p5 = por %p695_p3, %p694_p1 }
  0x37   : > { %p697_p6 = pnand %p696_p5, %p690_p0 }
  0xaa   : > { %v276_v11 = vpop.permute.xlu0 %275 }
  0xab   : > { %v363_v23 = vpop.permute.xlu1 %362 }
  0xae   : > { %v358_v19 = vpop.permute.xlu0 %357 }
  0xf3   : > { %v348_v10 = vpop.f32.mrf.mxu0 }
  0xf4   : > { %v349_v12 = vadd.f32 %v348_v10, %v276_v11 }
  0xf5   : > { %v350_v13 = vpop.f32.mrf.mxu0 }
  0xf6   : > { %v351_v14 = vadd.f32 %v350_v13, %v276_v11  ;;  %v353_v16 = vmax.f32 %v349_v12, 0.0 }
  0xf8   : > { %v354_v15 = vmax.f32 %v351_v14, 0.0 }
  0xfa   : > { %578 = vmatprep.subr.msk.mxu1 %vm372_vm1, %v354_v15 }
  0xfb   : > { %579 = vmatpush1.msk.msra.mxu1 %vm372_vm1, %v353_v16 }
  0xfc   : > { %580 = vmatmul.mubr.msk.f32.vlgmr.msra.gmra.mxu1 %vm365_vm2, %v265_v17 }
  0xfd   : > { %449 = vmatprep.mubr.f32.mxu1 %v772_v0 }
 0x100   : > { %581 = vmatmul.mubr.msk.f32.gmra.mxu1 %vm365_vm2, %v266_v18 }
 0x1bc   : > { %v445_v20 = vpop.f32.mrf.mxu1 }
 0x1bd   : > { %v446_v21 = vadd.f32 %v445_v20, %v358_v19 }
 0x1be   : > { %v447_v22 = vpop.f32.mrf.mxu1 }
 0x1bf   : > { %v456_v24 = vmax.f32 %v446_v21, 0.0  ;;  %v448_v25 = vadd.f32 %v447_v22, %v358_v19 }
 0x1c0   : > { %v451_v26 = vpop.f32.mrf.mxu1 }
 0x1c1   : > { %460 = vst [vmem:[%s260_s15] sm:$0xff] %v456_v24  ;;  %v457_v27 = vmax.f32 %v448_v25, 0.0  ;;  %v452_v28 = vadd.f32 %v451_v26, %v363_v23 }
 0x1c2   : > { %v453_v29 = vpop.f32.mrf.mxu1 }
 0x1c3   : > { %461 = vst [vmem:[%s260_s15 + $0x8] sm:$0xff] %v457_v27  ;;  %v458_v30 = vmax.f32 %v452_v28, 0.0  ;;  %v454_v31 = vadd.f32 %v453_v29, %v363_v23 }
 0x1c5   : > { %462 = vst [vmem:[%s260_s15 + $0x10] sm:$0xff] %v458_v30  ;;  %v459_v32 = vmax.f32 %v454_v31, 0.0 }
 0x1c7   : > { %463 = vst [vmem:[%s260_s15 + $0x18] sm:$0xff] %v459_v32 }
 0x1c8   : > { %700 = shalt.err (!%p697_p6)
}
 0x1c9   : > { %s701_s10 = scalar_lea.hbm %s927_s12, 512  ;;  %s705_s13 = scalar_lea.hbm %s980_s5, 1024 }
 0x1ca   : > { %p702_p7 = scmp.ne.s32.totalorder %s927_s12, %s701_s10  ;;  %p706_p13 = scmp.lt.s32.totalorder %s927_s12, %s980_s5 }
 0x1cb   : > { %p707_p2 = scmp.lt.s32.totalorder %s705_s13, %s701_s10 }
 0x1cc   : > { %p703_p10 = pnand %p702_p7, %p858_p9 }
 0x1cd   : > { %p708_p8 = por %p707_p2, %p706_p13 }
 0x1ce   : > { %p704_p4 = pneg %p703_p10 }
 0x1d0   : > { %p709_p12 = pnand %p708_p8, %p704_p4 }
 0x1d2   : > { %712 = shalt.err (!%p709_p12)
}
 0x1d3   : > { %s775_s17 = smov 256   ;;  %s776_s24 = smov 16  }
 0x1d4   : > { %591 = dma.vmem_to_hbm [thread:$0]  (%p858_p9), %s922_s14, 512, %s927_s12, %s465_s30, %s775_s17, %s775_s17, %s776_s24  }
 0x1d5 PF: > { %s495_s25 = sand.u32 1, %s747_s18   ;;  %p986_p0 = scmp.ge.s32.totalorder %s767_s23, 2 }
 0x1d6   : > { %s496_s21 = scalar_lea.sflag [#allocation4], %s495_s25 }
 0x1d7   : > { %p598_p1 = pnand %p986_p0, %p865_p11 }
 0x1d9   : > { %p599_p3 = pneg %p598_p1 }
 0x1db   : > { %742 = dma.done.wait (%p599_p3), %s496_s21, 512  }
 0x1dc   : > { %744 = vsyncadd (%p599_p3), %s496_s21, 4294966784  ;;  %s21_s23 = sadd.s32 1, %s767_s23   ;;  %s987_s18 = smov %s751_s19 }
 0x1dd   : > { %p18_p5 = scmp.ge.s32.totalorder %s21_s23, 4   ;;  %s988_s19 = smov %s755_s20 }
 0x1de   : > { %s989_s20 = smov %s863_s7  ;;  %s990_s21 = smov %s763_s22 }
 0x1df   : > { %s991_s22 = smov %s993_s26  ;;  %20 = sbr.rel (!%p18_p5) target bundleno = 6 (0x6), region = 85 }
 0x1e4   :  { %501 = vsyncpa [#allocation3], 1 }
 0x1e5   :  { %503 = vsyncpa [#allocation3 + $0x1], 1 }
 0x1e6   :  { %504 = vsyncpa [#allocation4], 1 }
 0x1e7   :  { %506 = vsyncpa [#allocation4 + $0x1], 1 }

</bundles_post_ra>
